<compile_context>
chip_gen: v7x
topology: tpu7x:2x2x1
jax: 0.10.0
libtpu: 0.0.40
codegen_flags: <defaults>
</compile_context>

<pallas_src>
import jax
import jax.numpy as jnp
from jax.experimental import pallas as pl
from jax.experimental.pallas import tpu as pltpu


LANE = 128
IN_BUFS_MAX = 3                       # deepest input buffering we may request
VMEM_BUDGET = 40 * 1024 * 1024        # conservative: leaves headroom on v7x (64 MiB)


def gcn_kernel(x_ref, adj_ref, w1_ref, b1_ref, w2_ref, b2_ref, out_ref):
    # x_ref:   (TB, N, F)  f32     adj_ref: (TB, N, N)  f32
    # w1_ref:  (F, F)      f32     b1_ref:  (1, F)      f32
    # w2_ref:  (F, O_pad)  f32     b2_ref:  (1, O_pad)  f32
    # out_ref: (TB, O_pad) f32
    tb, n, f = x_ref.shape

    # Cast to bf16 on the VPU (cheap pack op) right before the MXU; f32 was
    # DMA'd directly from HBM so there is no wrapper-side cast pass.
    x = x_ref[...].astype(jnp.bfloat16)          # (TB, N, F)
    adj = adj_ref[...].astype(jnp.bfloat16)      # (TB, N, N)
    w1 = w1_ref[...].astype(jnp.bfloat16)
    w2 = w2_ref[...].astype(jnp.bfloat16)

    # GraphConvolution: support = x @ W1 + b1 as one (TB*N, F) @ (F, F) matmul.
    support = jnp.dot(x.reshape(tb * n, f), w1, preferred_element_type=jnp.float32)
    support = (support + b1_ref[...]).reshape(tb, n, f).astype(jnp.bfloat16)

    # h = adj @ support (per graph), f32 accumulation, then ReLU.
    h = jnp.einsum("bnm,bmf->bnf", adj, support, preferred_element_type=jnp.float32)
    h = jnp.maximum(h, 0.0)

    # Fold the node-mean before the output linear (mean and Linear commute):
    # hbar = (1/N) * sum_n h   -> (TB, F); last matmul is (TB, F) @ (F, O_pad).
    hbar = jnp.sum(h, axis=1) * (1.0 / n)

    y = jnp.dot(hbar.astype(jnp.bfloat16), w2, preferred_element_type=jnp.float32)
    out_ref[...] = (y + b2_ref[...]).astype(out_ref.dtype)


def _spec(shape, index_map, buffers=None):
    """BlockSpec, optionally with an explicit pipeline buffer count."""
    if buffers is None:
        return pl.BlockSpec(shape, index_map)
    try:
        return pl.BlockSpec(shape, index_map, pipeline_mode=pl.Buffered(buffers))
    except TypeError:
        # Older jax without pipeline_mode kwarg: fall back to default buffering.
        return pl.BlockSpec(shape, index_map)


def _choose_tile(B, tb_max):
    """Pick (tb, B_pad): per-step graph tile and (minimally) padded batch."""
    tb_max = max(1, int(tb_max))
    if B <= tb_max:
        return B, B                                  # whole batch resident, no padding
    # Largest divisor of B that fits and keeps the output block sublane-dense.
    for d in range(min(B, tb_max), 0, -1):
        if B % d == 0 and d % 8 == 0:
            return d, B
    # Otherwise: largest multiple-of-8 tile that fits, with minimal batch padding.
    tb = (tb_max // 8) * 8
    if tb >= 8:
        return tb, ((B + tb - 1) // tb) * tb
    # Tiny-VMEM fallback: largest divisor of B that fits (no padding).
    for d in range(tb_max, 0, -1):
        if B % d == 0:
            return d, B
    return 1, B


def gcn_forward(x, adj, w1, b1, w2, b2):
    B, N, F = x.shape
    O = w2.shape[1]
    O_pad = ((O + LANE - 1) // LANE) * LANE

    # --- VMEM budget -> batch tile --------------------------------------
    per_graph = (
        N * N * (4 * IN_BUFS_MAX + 2)        # adj: f32 input buffers + bf16 copy
        + N * F * (4 * IN_BUFS_MAX + 2)      # x:   f32 input buffers + bf16 copy
        + N * F * (4 + 2 + 4)                # support f32 + bf16, h f32
        + O_pad * 4 * 2                      # output block (double-buffered)
    )
    const_bytes = (F * F + F * O_pad) * (4 + 2) + (F + O_pad) * 4
    tb_budget = max(1, (VMEM_BUDGET - const_bytes) // per_graph)
    tb, B_pad = _choose_tile(B, tb_budget)
    num_steps = B_pad // tb

    # vmem_limit from the actual resident-block estimate (with headroom),
    # capped below v7x's 64 MiB physical VMEM.
    est_vmem = const_bytes + per_graph * tb + (2 << 20)
    vmem_limit = int(min(56 << 20, max(est_vmem, 16 << 20)))

    # Deep input buffering only pays off when the grid has several steps.
    in_bufs = IN_BUFS_MAX if num_steps >= 3 else None

    # --- minimal padding (demo shapes need none for x/adj) ----------------
    if B_pad != B:
        x = jnp.pad(x, ((0, B_pad - B), (0, 0), (0, 0)))
        adj = jnp.pad(adj, ((0, B_pad - B), (0, 0), (0, 0)))
    if O_pad != O:
        w2 = jnp.pad(w2, ((0, 0), (0, O_pad - O)))
        b2 = jnp.pad(b2, ((0, 0), (0, O_pad - O)))

    # All operands stay f32 in HBM (bf16 cast happens in-kernel on the VPU).
    x = x.astype(jnp.float32)
    adj = adj.astype(jnp.float32)
    w1 = w1.astype(jnp.float32)
    b1 = b1.astype(jnp.float32)
    w2 = w2.astype(jnp.float32)
    b2 = b2.astype(jnp.float32)

    out = pl.pallas_call(
        gcn_kernel,
        out_shape=jax.ShapeDtypeStruct((B_pad, O_pad), jnp.float32),
        grid_spec=pltpu.PrefetchScalarGridSpec(
            num_scalar_prefetch=0,
            grid=(num_steps,),
            in_specs=[
                _spec((tb, N, F), lambda b: (b, 0, 0), buffers=in_bufs),   # x
                _spec((tb, N, N), lambda b: (b, 0, 0), buffers=in_bufs),   # adj
                _spec((F, F), lambda b: (0, 0), buffers=1),                # W1
                _spec((1, F), lambda b: (0, 0), buffers=1),                # b1
                _spec((F, O_pad), lambda b: (0, 0), buffers=1),            # W2
                _spec((1, O_pad), lambda b: (0, 0), buffers=1),            # b2
            ],
            out_specs=pl.BlockSpec((tb, O_pad), lambda b: (b, 0)),
        ),
        compiler_params=pltpu.CompilerParams(
            dimension_semantics=("parallel",),
            vmem_limit_bytes=vmem_limit,
        ),
    )(x, adj, w1, b1, w2, b2)

    return out[:B, :O]


def reference_forward(x, adj, w1, b1, w2, b2):
    support = jnp.einsum("bnf,fg->bng", x, w1) + b1
    h = jnp.einsum("bnm,bmf->bnf", adj, support)
    h = jnp.maximum(h, 0.0)
    y = jnp.einsum("bnf,fo->bno", h, w2) + b2
    return jnp.mean(y, axis=1)


if __name__ == "__main__":
    B, N, NFEAT, NOUT = 2, 16, 32, 32

    key = jax.random.PRNGKey(0)
    kx, ka, kw1, kb1, kw2, kb2 = jax.random.split(key, 6)

    x = jax.random.normal(kx, (B, N, NFEAT), dtype=jnp.float32)
    # symmetric row-normalized-ish adjacency (values in [0, 1))
    adj_raw = jax.random.uniform(ka, (B, N, N), dtype=jnp.float32)
    adj = (adj_raw + jnp.swapaxes(adj_raw, 1, 2)) / (2.0 * N)

    # deterministic parameter init (shapes from GCN.__init__)
    w1 = jax.random.normal(kw1, (NFEAT, NFEAT), dtype=jnp.float32) * 0.1
    b1 = jax.random.normal(kb1, (1, NFEAT), dtype=jnp.float32) * 0.1
    w2 = jax.random.normal(kw2, (NFEAT, NOUT), dtype=jnp.float32) * 0.1
    b2 = jax.random.normal(kb2, (1, NOUT), dtype=jnp.float32) * 0.1

    out = gcn_forward(x, adj, w1, b1, w2, b2)
    out = jax.block_until_ready(out)

    ref = reference_forward(x, adj, w1, b1, w2, b2)
    assert out.shape == (B, NOUT)
    # bf16 MXU inputs with f32 accumulation -> loosened tolerance vs f32 ref.
    assert jnp.allclose(out, ref, atol=1e-2, rtol=5e-2)

    print("KERNEL_OK")
</pallas_src>

<mosaic_0001>
module attributes {stable_mosaic.version = 11 : i64} {
  func.func @gcn_kernel(%arg0: i32, %arg1: memref<2x16x32xf32, #tpu.memory_space<vmem>>, %arg2: memref<2x16x16xf32, #tpu.memory_space<vmem>>, %arg3: memref<32x32xf32, #tpu.memory_space<vmem>>, %arg4: memref<1x32xf32, #tpu.memory_space<vmem>>, %arg5: memref<32x128xf32, #tpu.memory_space<vmem>>, %arg6: memref<1x128xf32, #tpu.memory_space<vmem>>, %arg7: memref<2x128xf32, #tpu.memory_space<vmem>>) attributes {dimension_semantics = [#tpu.dimension_semantics<parallel>], iteration_bounds = array<i64: 1>, scalar_prefetch = 0 : i64, scratch_operands = 0 : i64, tpu.core_type = #tpu.core_type<tc>, window_params = [{transform_indices = @transform_0, window_bounds = array<i64: 2, 16, 32>}, {transform_indices = @transform_1, window_bounds = array<i64: 2, 16, 16>}, {pipeline_mode = #tpu.pipeline_mode<synchronous>, transform_indices = @transform_2, window_bounds = array<i64: 32, 32>}, {pipeline_mode = #tpu.pipeline_mode<synchronous>, transform_indices = @transform_3, window_bounds = array<i64: 1, 32>}, {pipeline_mode = #tpu.pipeline_mode<synchronous>, transform_indices = @transform_4, window_bounds = array<i64: 32, 128>}, {pipeline_mode = #tpu.pipeline_mode<synchronous>, transform_indices = @transform_5, window_bounds = array<i64: 1, 128>}, {transform_indices = @transform_6, window_bounds = array<i64: 2, 128>}]} {
    %c0 = arith.constant 0 : index
    %c0_0 = arith.constant 0 : index
    %c0_1 = arith.constant 0 : index
    %0 = vector.load %arg1[%c0, %c0_0, %c0_1] : memref<2x16x32xf32, #tpu.memory_space<vmem>>, vector<2x16x32xf32>
    %1 = arith.truncf %0 : vector<2x16x32xf32> to vector<2x16x32xbf16>
    %c0_2 = arith.constant 0 : index
    %c0_3 = arith.constant 0 : index
    %c0_4 = arith.constant 0 : index
    %2 = vector.load %arg2[%c0_2, %c0_3, %c0_4] : memref<2x16x16xf32, #tpu.memory_space<vmem>>, vector<2x16x16xf32>
    %3 = arith.truncf %2 : vector<2x16x16xf32> to vector<2x16x16xbf16>
    %c0_5 = arith.constant 0 : index
    %c0_6 = arith.constant 0 : index
    %4 = vector.load %arg3[%c0_5, %c0_6] : memref<32x32xf32, #tpu.memory_space<vmem>>, vector<32x32xf32>
    %5 = arith.truncf %4 : vector<32x32xf32> to vector<32x32xbf16>
    %c0_7 = arith.constant 0 : index
    %c0_8 = arith.constant 0 : index
    %6 = vector.load %arg5[%c0_7, %c0_8] : memref<32x128xf32, #tpu.memory_space<vmem>>, vector<32x128xf32>
    %7 = arith.truncf %6 : vector<32x128xf32> to vector<32x128xbf16>
    %8 = vector.shape_cast %1 : vector<2x16x32xbf16> to vector<32x32xbf16>
    %cst = arith.constant dense<0.000000e+00> : vector<32x32xf32>
    %9 = tpu.matmul %8, %5, %cst {dimension_numbers = #tpu.dot_dimension_numbers<[1], [0], [0], [1], [0, 0, 1, 1], [], []>} : vector<32x32xbf16>, vector<32x32xbf16>, vector<32x32xf32> -> vector<32x32xf32>
    %c0_9 = arith.constant 0 : index
    %c0_10 = arith.constant 0 : index
    %10 = vector.load %arg4[%c0_9, %c0_10] : memref<1x32xf32, #tpu.memory_space<vmem>>, vector<1x32xf32>
    %11 = vector.broadcast %10 : vector<1x32xf32> to vector<32x32xf32>
    %12 = arith.addf %9, %11 : vector<32x32xf32>
    %13 = vector.shape_cast %12 : vector<32x32xf32> to vector<2x16x32xf32>
    %14 = arith.truncf %13 : vector<2x16x32xf32> to vector<2x16x32xbf16>
    "tpu.trace_start"() <{level = 10 : i32, message = "bnm,bmf->bnf"}> : () -> ()
    %cst_11 = arith.constant dense<0.000000e+00> : vector<2x16x32xf32>
    %15 = tpu.matmul %3, %14, %cst_11 {dimension_numbers = #tpu.dot_dimension_numbers<[2], [1], [1], [2], [0, 0, 0, 1, 1, 2], [0], [0]>} : vector<2x16x16xbf16>, vector<2x16x32xbf16>, vector<2x16x32xf32> -> vector<2x16x32xf32>
    "tpu.trace_stop"() : () -> ()
    %cst_12 = arith.constant 0.000000e+00 : f32
    %16 = vector.broadcast %cst_12 : f32 to vector<2x16x32xf32>
    %17 = arith.maximumf %15, %16 : vector<2x16x32xf32>
    %cst_13 = arith.constant dense<0.000000e+00> : vector<2x32xf32>
    %18 = vector.multi_reduction <add>, %17, %cst_13 [1] : vector<2x16x32xf32> to vector<2x32xf32>
    %cst_14 = arith.constant 6.250000e-02 : f32
    %19 = vector.broadcast %cst_14 : f32 to vector<2x32xf32>
    %20 = arith.mulf %18, %19 : vector<2x32xf32>
    %21 = arith.truncf %20 : vector<2x32xf32> to vector<2x32xbf16>
    %cst_15 = arith.constant dense<0.000000e+00> : vector<2x128xf32>
    %22 = tpu.matmul %21, %7, %cst_15 {dimension_numbers = #tpu.dot_dimension_numbers<[1], [0], [0], [1], [0, 0, 1, 1], [], []>} : vector<2x32xbf16>, vector<32x128xbf16>, vector<2x128xf32> -> vector<2x128xf32>
    %c0_16 = arith.constant 0 : index
    %c0_17 = arith.constant 0 : index
    %23 = vector.load %arg6[%c0_16, %c0_17] : memref<1x128xf32, #tpu.memory_space<vmem>>, vector<1x128xf32>
    %24 = vector.broadcast %23 : vector<1x128xf32> to vector<2x128xf32>
    %25 = arith.addf %22, %24 : vector<2x128xf32>
    %c0_18 = arith.constant 0 : index
    %c0_19 = arith.constant 0 : index
    %26 = vector.load %arg7[%c0_18, %c0_19] : memref<2x128xf32, #tpu.memory_space<vmem>>, vector<2x128xf32>
    tpu.vector_store %arg7[%c0_18, %c0_19], %25 {strides = array<i32>} : memref<2x128xf32, #tpu.memory_space<vmem>>, vector<2x128xf32>,
    return
  }
  func.func @transform_0(%arg0: i32) -> (i32, i32, i32) {
    %c0_i32 = arith.constant 0 : i32
    %c0_i32_0 = arith.constant 0 : i32
    %c0_i32_1 = arith.constant 0 : i32
    return %arg0, %c0_i32, %c0_i32_0 : i32, i32, i32
  }
  func.func @transform_1(%arg0: i32) -> (i32, i32, i32) {
    %c0_i32 = arith.constant 0 : i32
    %c0_i32_0 = arith.constant 0 : i32
    %c0_i32_1 = arith.constant 0 : i32
    return %arg0, %c0_i32, %c0_i32_0 : i32, i32, i32
  }
  func.func @transform_2(%arg0: i32) -> (i32, i32) {
    %c0_i32 = arith.constant 0 : i32
    %c0_i32_0 = arith.constant 0 : i32
    %c0_i32_1 = arith.constant 0 : i32
    return %c0_i32, %c0_i32_0 : i32, i32
  }
  func.func @transform_3(%arg0: i32) -> (i32, i32) {
    %c0_i32 = arith.constant 0 : i32
    %c0_i32_0 = arith.constant 0 : i32
    %c0_i32_1 = arith.constant 0 : i32
    return %c0_i32, %c0_i32_0 : i32, i32
  }
  func.func @transform_4(%arg0: i32) -> (i32, i32) {
    %c0_i32 = arith.constant 0 : i32
    %c0_i32_0 = arith.constant 0 : i32
    %c0_i32_1 = arith.constant 0 : i32
    return %c0_i32, %c0_i32_0 : i32, i32
  }
  func.func @transform_5(%arg0: i32) -> (i32, i32) {
    %c0_i32 = arith.constant 0 : i32
    %c0_i32_0 = arith.constant 0 : i32
    %c0_i32_1 = arith.constant 0 : i32
    return %c0_i32, %c0_i32_0 : i32, i32
  }
  func.func @transform_6(%arg0: i32) -> (i32, i32) {
    %c0_i32 = arith.constant 0 : i32
    %c0_i32_0 = arith.constant 0 : i32
    return %arg0, %c0_i32 : i32, i32
  }
}

</mosaic_0001>

<bundles_post_ra>
// kernel: tpu_custom_call.1
= control target key start
LH: loop header
LB: loop body
LE: loop exit
PB: predicated region body
PF: predicated region fallthrough
CT: control target
= control target key end

     0   :  { %11 = vsyncpa [#allocation3], 0  ;;  %s678_s0 = inlined_call_operand.hbm [shape: f32[2,16,32], index: 0, kind: input, shape index: {}]   ;;  %s679_s1 = inlined_call_operand.hbm [shape: f32[2,16,16], index: 1, kind: input, shape index: {}]   ;;  %s680_s2 = inlined_call_operand.hbm [shape: f32[32,32], index: 2, kind: input, shape index: {}]   ;;  %s681_s3 = inlined_call_operand.vmem [shape: f32[1,32], index: 3, kind: input, shape index: {}]   ;;  %s682_s4 = inlined_call_operand.hbm [shape: f32[32,128], index: 4, kind: input, shape index: {}]   ;;  %s683_s5 = inlined_call_operand.vmem [shape: f32[1,128], index: 5, kind: input, shape index: {}]   ;;  %s684_s6 = inlined_call_operand.hbm [shape: f32[2,128], index: 6, kind: output, shape index: {}]  }
   0x1   :  { %12 = vsyncpa [#allocation6], 0 }
   0x2   :  { %13 = vsyncpa [#allocation9], 0 }
   0x3   :  { %14 = vsyncpa [#allocation4], 0  ;;  %s532_s21 = smov [#allocation5]   ;;  %s533_s23 = smov [#allocation2]  }
   0x4   :  { %s32_s22 = sshll.u32 %s532_s21, 4  ;;  %s20_s24 = sshll.u32 %s533_s23, 4  ;;  %s33_s22 = int_to_ptr.vmem [resolvable:$true] %s32_s22  ;;  %s576_s24 = int_to_ptr.vmem [resolvable:$true] %s20_s24 }
   0x5   :  { %s414_s27 = scalar_lea.hbm %s679_s1, 512 }
   0x6   :  { %p415_p0 = scmp.ne.s32.totalorder %s679_s1, %s414_s27  ;;  %p418_p1 = scmp.lt.u32.totalorder %s414_s27, %s679_s1 }
   0x8   :  { %p420_p2 = pnand %p418_p1, %p415_p0 }
   0xa   :  { %423 = shalt.err (!%p420_p2)
}
   0xb   :  { %s424_s8 = scalar_lea.vmem %s33_s22, 512  ;;  %p429_p4 = scmp.lt.s32.totalorder %s33_s22, %s33_s22 }
   0xc   :  { %p425_p3 = scmp.ne.s32.totalorder %s33_s22, %s424_s8  ;;  %p430_p5 = scmp.lt.s32.totalorder %s424_s8, %s424_s8 }
   0xe   :  { %p431_p6 = por %p430_p5, %p429_p4 }
  0x10   :  { %p432_p7 = pnand %p431_p6, %p425_p3 }
  0x12   :  { %435 = shalt.err (!%p432_p7)
}
  0x13   :  { %s534_s9 = smov 128   ;;  %s535_s10 = smov 8  }
  0x14   :  { %38 = dma.hbm_to_vmem [thread:$0]  %s679_s1, 512, %s33_s22, [#allocation6], %s534_s9, %s534_s9, %s535_s10  }
  0x15   :  { %s436_s15 = scalar_lea.hbm %s678_s0, 512 }
  0x16   :  { %p437_p8 = scmp.ne.s32.totalorder %s678_s0, %s436_s15  ;;  %p440_p9 = scmp.lt.u32.totalorder %s436_s15, %s678_s0 }
  0x18   :  { %p442_p10 = pnand %p440_p9, %p437_p8 }
  0x1a   :  { %445 = shalt.err (!%p442_p10)
}
  0x1b   :  { %s446_s20 = scalar_lea.vmem %s576_s24, 512  ;;  %p451_p12 = scmp.lt.s32.totalorder %s576_s24, %s576_s24 }
  0x1c   :  { %p447_p11 = scmp.ne.s32.totalorder %s576_s24, %s446_s20  ;;  %p452_p13 = scmp.lt.s32.totalorder %s446_s20, %s446_s20 }
  0x1e   :  { %p453_p0 = por %p452_p13, %p451_p12 }
  0x20   :  { %p454_p1 = pnand %p453_p0, %p447_p11 }
  0x22   :  { %457 = shalt.err (!%p454_p1)
}
  0x23   :  { %26 = dma.hbm_to_vmem [thread:$0]  %s678_s0, 512, %s576_s24, [#allocation3], %s534_s9, %s534_s9, %s535_s10  }
  0x24   :  { %s536_s22 = smov [#allocation7]   ;;  %s537_s25 = smov [#allocation8]  }
  0x25   :  { %s44_s23 = sshll.u32 %s536_s22, 4  ;;  %s58_s26 = sshll.u32 %s537_s25, 4  ;;  %s45_s23 = int_to_ptr.vmem [resolvable:$true] %s44_s23  ;;  %s613_s26 = int_to_ptr.vmem [resolvable:$true] %s58_s26 }
  0x26   :  { %s458_s29 = scalar_lea.hbm %s680_s2, 512 }
  0x27   :  { %p459_p2 = scmp.ne.s32.totalorder %s680_s2, %s458_s29  ;;  %p462_p3 = scmp.lt.u32.totalorder %s458_s29, %s680_s2 }
  0x29   :  { %p464_p4 = pnand %p462_p3, %p459_p2 }
  0x2b   :  { %467 = shalt.err (!%p464_p4)
}
  0x2c   :  { %s468_s0 = scalar_lea.vmem %s45_s23, 512  ;;  %p473_p6 = scmp.lt.s32.totalorder %s45_s23, %s45_s23 }
  0x2d   :  { %p469_p5 = scmp.ne.s32.totalorder %s45_s23, %s468_s0  ;;  %p474_p7 = scmp.lt.s32.totalorder %s468_s0, %s468_s0 }
  0x2f   :  { %p475_p8 = por %p474_p7, %p473_p6 }
  0x31   :  { %p476_p9 = pnand %p475_p8, %p469_p5 }
  0x33   :  { %479 = shalt.err (!%p476_p9)
}
  0x34   :  { %50 = dma.hbm_to_vmem [thread:$0]  %s680_s2, 512, %s45_s23, [#allocation6], %s534_s9, %s534_s9, %s535_s10  }
  0x35   :  { %s480_s15 = scalar_lea.hbm %s682_s4, 512 }
  0x36   :  { %p481_p10 = scmp.ne.s32.totalorder %s682_s4, %s480_s15  ;;  %p484_p11 = scmp.lt.u32.totalorder %s480_s15, %s682_s4 }
  0x38   :  { %p486_p12 = pnand %p484_p11, %p481_p10 }
  0x3a   :  { %489 = shalt.err (!%p486_p12)
}
  0x3b   :  { %s490_s20 = scalar_lea.vmem %s613_s26, 512  ;;  %p495_p0 = scmp.lt.s32.totalorder %s613_s26, %s613_s26 }
  0x3c   :  { %p491_p13 = scmp.ne.s32.totalorder %s613_s26, %s490_s20  ;;  %p496_p1 = scmp.lt.s32.totalorder %s490_s20, %s490_s20 }
  0x3e   :  { %p497_p2 = por %p496_p1, %p495_p0 }
  0x40   :  { %p498_p3 = pnand %p497_p2, %p491_p13 }
  0x42   :  { %501 = shalt.err (!%p498_p3)
}
  0x43   :  { %64 = dma.hbm_to_vmem [thread:$0]  %s682_s4, 512, %s613_s26, [#allocation9], %s534_s9, %s534_s9, %s535_s10  }
  0x44   :  { %524 = dma.done.wait [#allocation3], 512  }
  0x45   :  { %525 = vsyncadd [#allocation3], 4294966784 }
  0x46   :  { %526 = dma.done.wait [#allocation6], 1024  }
  0x47   :  { %527 = vsyncadd [#allocation6], 4294966272 }
  0x48   :  { %528 = dma.done.wait [#allocation9], 512  }
  0x49   :  { %529 = vsyncadd [#allocation9], 4294966784  ;;  %v92_v0 = vld [vmem:[#allocation7] sm:$0xff]  ;;  %v93_v1 = vld [vmem:[#allocation7 + $0x8] sm:$0xff]  ;;  %vm111_vm0 = vcmask 261120   ;;  %v538_v12 = vmov 0.0  }
  0x4a   :  { %v94_v2 = vld [vmem:[#allocation7 + $0x10] sm:$0xff]  ;;  %v96_v3 = vpack.c.bf16 %v93_v1, %v92_v0  ;;  %v95_v4 = vld [vmem:[#allocation7 + $0x18] sm:$0xff]  ;;  %v80_v5 = vld [vmem:[#allocation2] sm:$0xff]  ;;  %385 = vmatprep.subr.bf16.mxu1 %v538_v12  ;;  %vm539_vm1 = vmmov 0   ;;  %vm169_vm2 = vcmask 130048   ;;  %vm295_vm3 = vcmask 1041409  }
  0x4b   :  { %v81_v6 = vld [vmem:[#allocation2 + $0x8] sm:$0xff]  ;;  %v97_v7 = vpack.c.bf16 %v95_v4, %v94_v2  ;;  %v82_v9 = vld [vmem:[#allocation2 + $0x10] sm:$0xff]  ;;  %v83_v10 = vld [vmem:[#allocation2 + $0x18] sm:$0xff]  ;;  %387 = vmatprep.mubr.msk.bf16.mxu1 %vm539_vm1, %v538_v12  ;;  %s540_s21 = smov [#allocation10]  }
  0x4c   :  { %v84_v8 = vpack.c.bf16 %v81_v6, %v80_v5  ;;  %377 = vmatprep.subr.bf16.mxu0 %v96_v3  ;;  %v85_v11 = vpack.c.bf16 %v83_v10, %v82_v9  ;;  %v359_v14 = vld [vmem:[%s681_s3] ss:$0 sm:$0xff]  ;;  %v87_v23 = vld [vmem:[#allocation5 + $0x8] sm:$0xff]  ;;  %v88_v27 = vld [vmem:[#allocation5 + $0x10] sm:$0xff]  ;;  %s348_s22 = sshll.u32 %s540_s21, 4  ;;  %s349_s22 = int_to_ptr.vmem [resolvable:$true] %s348_s22 }
  0x4d   :  { %378 = vmatpush3.bf16.msra.mxu0 %v96_v3  ;;  %v86_v22 = vld [vmem:[#allocation5] sm:$0xff]  ;;  %v89_v28 = vld [vmem:[#allocation5 + $0x18] sm:$0xff]  ;;  %v99_v31 = vld [vmem:[#allocation8 + $0x8] sm:$0xff]  ;;  %s502_s23 = scalar_lea.vmem %s349_s22, 32  ;;  %p507_p5 = scmp.lt.s32.totalorder %s349_s22, %s349_s22 }
  0x4e   :  { %381 = vmatprep.mubr.msk.bf16.mxu0 %vm111_vm0, %v84_v8  ;;  %379 = vmatprep.subr.bf16.mxu0 %v97_v7  ;;  %v90_v26 = vpack.c.bf16 %v87_v23, %v86_v22  ;;  %v91_v29 = vpack.c.bf16 %v89_v28, %v88_v27  ;;  %v98_v30 = vld [vmem:[#allocation8] sm:$0xff]  ;;  %v100_v33 = vld [vmem:[#allocation8 + $0x10] sm:$0xff]  ;;  %v101_v34 = vld [vmem:[#allocation8 + $0x18] sm:$0xff]  ;;  %p503_p4 = scmp.ne.s32.totalorder %s349_s22, %s502_s23  ;;  %p508_p6 = scmp.lt.s32.totalorder %s502_s23, %s502_s23 }
  0x4f   :  { %v102_v32 = vpack.c.bf16 %v99_v31, %v98_v30  ;;  %v103_v35 = vpack.c.bf16 %v101_v34, %v100_v33  ;;  %v364_v10 = vld [vmem:[%s683_s5] ss:$0 sm:$0xff] }
  0x50   :  { %p509_p7 = por %p508_p6, %p507_p5 }
  0x51   :  { %380 = vmatpush3.bf16.msra.mxu0 %v97_v7 }
  0x52   :  { %397 = vmatprep.subr.bf16.mxu0 %v538_v12  ;;  %p510_p8 = pnand %p509_p7, %p503_p4 }
  0x54   :  { %382 = vmatmul.mubr.msk.bf16.vlgmr.msra.gmra.mrb[0].mxu0 %vm111_vm0, %v85_v11 }
  0x55   :  { %401 = vmatprep.mubr.msk.bf16.mxu0 %vm539_vm1, %v538_v12  ;;  %398 = vmatpush3.bf16.msra.mxu0 %v102_v32 }
  0x56   :  { %399 = vmatprep.subr.bf16.mxu0 %v538_v12 }
  0x59   :  { %400 = vmatpush3.bf16.msra.mxu0 %v103_v35 }
 0x127   :  { %v383_v13 = vpop.f32.mrb[0].mxu0 }
 0x128   :  { %v152_v15 = vpop.f32.mrb[1].mxu0  ;;  %v161_v17 = vadd.f32 %v383_v13, %v359_v14 }
 0x129   :  { %v384_v16 = vpop.f32.mrb[2].mxu0  ;;  %v153_v20 = vadd.f32 %v359_v14, %v152_v15 }
 0x12a   :  { %v164_v18 = vadd.f32 %v384_v16, %v359_v14  ;;  %v155_v19 = vpop.f32.mrb[3].mxu0 }
 0x12b   :  { %v156_v21 = vadd.f32 %v359_v14, %v155_v19 }
 0x12c   :  { %v168_v24 = vpack.c.bf16 %v164_v18, %v161_v17 }
 0x12d   :  { %v167_v25 = vpack.c.bf16 %v156_v21, %v153_v20 }
 0x12f   :  { %386 = vmatpush3.bf16.msra.mxu1 %v167_v25 }
 0x130   :  { %391 = vmatprep.subr.bf16.mxu1 %v538_v12 }
 0x132   :  { %388 = vmatmul.mubr.msk.bf16.vlgmr.msra.gmra.mrb[0].mxu1 %vm169_vm2, %v90_v26 }
 0x133   :  { %392 = vmatpush3.bf16.msra.mxu1 %v168_v24  ;;  %393 = vmatprep.mubr.msk.bf16.mxu1 %vm539_vm1, %v538_v12 }
 0x13a   :  { %394 = vmatmul.mubr.msk.bf16.vlgmr.msra.gmra.mrb[4].mxu1 %vm169_vm2, %v91_v29 }
 0x205   :  { %v207_v36 = vpop.f32.mrb[0].mxu1 }
 0x206   :  { %v258_v37 = vmax.f32 %v207_v36, 0.0  ;;  %v389_v38 = vpop.f32.mrb[1].mxu1 }
 0x207   :  { %v210_v39 = vpop.f32.mrb[2].mxu1 }
 0x208   :  { %v259_v40 = vmax.f32 %v210_v39, 0.0  ;;  %v390_v41 = vpop.f32.mrb[3].mxu1  ;;  %v262_v42 = vsel %vm111_vm0, %v258_v37, 0.0 }
 0x20a   :  { %v263_v43 = vsel %vm111_vm0, %v259_v40, 0.0 }
 0x20b   :  { %v264_v44 = vadd.f32 %v263_v43, %v262_v42 }
 0x20d   :  { %v265_v45 = vrot.slane %v264_v44, 4  ;;  %v251_v46 = vpop.f32.mrb[4].mxu1 }
 0x20e   :  { %v260_v47 = vmax.f32 %v251_v46, 0.0  ;;  %v395_v48 = vpop.f32.mrb[5].mxu1 }
 0x20f   :  { %v266_v49 = vadd.f32 %v265_v45, %v264_v44  ;;  %v254_v50 = vpop.f32.mrb[6].mxu1 }
 0x210   :  { %v261_v51 = vmax.f32 %v254_v50, 0.0  ;;  %v396_v52 = vpop.f32.mrb[7].mxu1  ;;  %v271_v54 = vsel %vm111_vm0, %v260_v47, 0.0 }
 0x211   :  { %v267_v53 = vrot.slane %v266_v49, 2 }
 0x212   :  { %v272_v55 = vsel %vm111_vm0, %v261_v51, 0.0 }
 0x213   :  { %v268_v56 = vadd.f32 %v267_v53, %v266_v49  ;;  %v273_v57 = vadd.f32 %v272_v55, %v271_v54 }
 0x215   :  { %v269_v58 = vrot.slane %v268_v56, 1  ;;  %v274_v59 = vrot.slane %v273_v57, 4 }
 0x217   :  { %v275_v60 = vadd.f32 %v274_v59, %v273_v57  ;;  %v270_v61 = vadd.f32 %v269_v58, %v268_v56 }
 0x219   :  { %v276_v62 = vrot.slane %v275_v60, 2  ;;  %v280_v0 = vmul.f32 0.0625, %v270_v61 }
 0x21b   :  { %v277_v63 = vadd.f32 %v276_v62, %v275_v60  ;;  %v282_v3 = vpack.c.bf16 %v280_v0, %v280_v0 }
 0x21d   :  { %v278_v1 = vrot.slane %v277_v63, 1  ;;  %v293_v6 = vunpack.c.l.b16 %v282_v3 }
 0x21f   :  { %v279_v2 = vadd.f32 %v278_v1, %v277_v63 }
 0x221   :  { %v281_v4 = vmul.f32 0.0625, %v279_v2 }
 0x223   :  { %v283_v5 = vpack.c.bf16 %v281_v4, %v281_v4 }
 0x225   :  { %v294_v7 = vunpack.c.l.b16 %v283_v5 }
 0x227   :  { %v296_v8 = vsel %vm295_vm3, %v294_v7, %v293_v6 }
 0x228   :  { %v297_v9 = vpack.c.b16 %v296_v8, %v296_v8 }
 0x22a   :  { %402 = vmatmul.mubr.msk.bf16.vlgmr.msra.gmra.mrb[4].mxu0 %vm111_vm0, %v297_v9 }
 0x2fd   :  { %v335_v11 = vpop.f32.mrb[4].mxu0 }
 0x2fe   :  { %v336_v12 = vadd.f32 %v364_v10, %v335_v11  ;;  %v403_v13 = vpop.f32.mrb[5].mxu0 }
 0x2ff   :  { %v338_v14 = vpop.f32.mrb[6].mxu0 }
 0x300   :  { %341 = vst [vmem:[#allocation10] sm:$0x3] %v336_v12  ;;  %v404_v15 = vpop.f32.mrb[7].mxu0 }
 0x301   :  { %513 = shalt.err (!%p510_p8)
}
 0x302   :  { %s514_s5 = scalar_lea.hbm %s684_s6, 32 }
 0x303   :  { %p515_p9 = scmp.ne.s32.totalorder %s684_s6, %s514_s5  ;;  %p518_p10 = scmp.lt.u32.totalorder %s514_s5, %s684_s6 }
 0x305   :  { %p520_p11 = pnand %p518_p10, %p515_p9 }
 0x307   :  { %523 = shalt.err (!%p520_p11)
}
 0x308   :  { %351 = dma.vmem_to_hbm [thread:$0]  %s349_s22, 32, %s684_s6, [#allocation4]  }
 0x309   :  { %530 = dma.done.wait [#allocation4], 32  }
 0x30a   :  { %531 = vsyncadd [#allocation4], 4294967264 }
 0x30b   :  { %355 = vsyncpa [#allocation3], 1 }
 0x30c   :  { %356 = vsyncpa [#allocation6], 1 }
 0x30d   :  { %357 = vsyncpa [#allocation9], 1 }
 0x30e   :  { %358 = vsyncpa [#allocation4], 1 }

</bundles_post_ra>
